<compile_context>
chip_gen: v5e
topology: v5e:2x2
jax: 0.10.0
libtpu: 0.0.40
codegen_flags: <defaults>
</compile_context>

<pallas_src>
import functools

import jax
import jax.numpy as jnp
from jax.experimental import pallas as pl
from jax.experimental.pallas import tpu as pltpu

LANE = 128        # lane width: feature dims padded to multiples of this
NODE_PAD = 256    # node counts padded to multiples of this (tile friendly)
TLIN = 256        # row tile for the X@W kernel


# ------------------------------- utilities --------------------------------- #

def _round_up(n, m):
    return ((n + m - 1) // m) * m


def _pad2d(x, rows, cols, dtype=None):
    x = jnp.pad(x, ((0, rows - x.shape[0]), (0, cols - x.shape[1])))
    return x if dtype is None else x.astype(dtype)


def _fit_rows(x, rows):
    if x.shape[0] < rows:
        return jnp.pad(x, ((0, rows - x.shape[0]), (0, 0)))
    return x[:rows]


@functools.lru_cache(maxsize=None)
def _vmem_limit():
    """Generation-aware scoped-VMEM limit with headroom (v7x: ~54 MiB of 64,
    v5e/v6e: ~110 MiB of 128). Falls back to a v7x-safe value."""
    try:
        cap = int(pltpu.get_tpu_info().vmem_capacity_bytes)
    except Exception:
        cap = 64 * 1024 * 1024
    return min(int(cap * 0.85), 110 * 1024 * 1024)


def _pick_tm(n_dst_p):
    """Largest of {512,256,128} dividing n_dst_p while keeping >= 2 dst-row
    tiles (so both v7x TensorCores get work on the parallel axis)."""
    for t in (512, 256, 128):
        if n_dst_p % t == 0 and n_dst_p // t >= 2:
            return t
    return 128


def _pick_tk(n_src_p, tm, fout_p, out_bytes, budget):
    """Largest 256-multiple divisor of n_src_p whose double-buffered working
    set fits `budget` (prefers full XW residency -> k-grid extent 1)."""
    blocks = n_src_p // NODE_PAD
    best = NODE_PAD
    for d in range(1, blocks + 1):
        if blocks % d:
            continue
        tk = d * NODE_PAD
        ws = (2 * tm * tk * 2            # A tile, bf16, double-buffered
              + 2 * tk * fout_p * 2      # XW tile, bf16, double-buffered
              + tm * fout_p * 4          # f32 accumulator scratch
              + 2 * tm * fout_p * out_bytes  # output tile, double-buffered
              + 2 * fout_p * 4)          # bias
        if ws <= budget:
            best = tk
    return best


# ----------------------------- Pallas kernels ------------------------------ #

def _xw_kernel(sid_ref, x_ref, w_ref, o_ref):
    # One (relation, row-tile) block of XW = X[src(r)] @ W[r] (MXU, bf16 in,
    # f32 accumulate, bf16 out, written straight into the [R, n_src_p, fout]
    # slab).  sid_ref (scalar prefetch) is only used by the index maps.
    del sid_ref
    o_ref[...] = jnp.dot(x_ref[...], w_ref[...],
                         preferred_element_type=jnp.float32).astype(o_ref.dtype)


def linear_slab(src_ids, x_stack, w_stack):
    """XW slab [R, n_src_p, fout_p] bf16 for one dst group, in one pallas_call.

    src_ids: int32 [R] mapping relation -> index into x_stack.
    x_stack: [S, n_src_p, fin_p] bf16 (unique source-type features).
    w_stack: [R, fin_p, fout_p] bf16 (pre-padded relation weights)."""
    _, n_src_p, fin_p = x_stack.shape
    R, _, fout_p = w_stack.shape
    return pl.pallas_call(
        _xw_kernel,
        out_shape=jax.ShapeDtypeStruct((R, n_src_p, fout_p), jnp.bfloat16),
        grid_spec=pltpu.PrefetchScalarGridSpec(
            num_scalar_prefetch=1,
            grid=(R, n_src_p // TLIN),
            in_specs=[
                pl.BlockSpec((pl.Squeezed(), TLIN, fin_p),
                             lambda r, i, sid: (sid[r], i, 0)),
                pl.BlockSpec((pl.Squeezed(), fin_p, fout_p),
                             lambda r, i, sid: (r, 0, 0)),
            ],
            out_specs=pl.BlockSpec((pl.Squeezed(), TLIN, fout_p),
                                   lambda r, i, sid: (r, i, 0)),
        ),
        compiler_params=pltpu.CompilerParams(
            dimension_semantics=("parallel", "parallel"),
            vmem_limit_bytes=_vmem_limit()),
    )(src_ids, x_stack, w_stack)


def _rel_sum_kernel(a_ref, xw_ref, b_ref, o_ref, acc_ref, *, relu):
    # Fused: sum over relations (and contraction tiles) of A_hat[r] @ XW[r],
    # + summed bias, optional ReLU, cast to output dtype.
    # Grid = (dst row tile, relation, k tile); relation/k are reduction axes
    # accumulating into the f32 VMEM scratch.
    r, k = pl.program_id(1), pl.program_id(2)

    @pl.when(jnp.logical_and(r == 0, k == 0))
    def _():
        acc_ref[...] = jnp.zeros_like(acc_ref)

    acc_ref[...] += jnp.dot(a_ref[...], xw_ref[...],
                            preferred_element_type=jnp.float32)

    @pl.when(jnp.logical_and(r == pl.num_programs(1) - 1,
                             k == pl.num_programs(2) - 1))
    def _():
        out = acc_ref[...] + b_ref[...]
        if relu:
            out = jnp.maximum(out, 0.0)
        o_ref[...] = out.astype(o_ref.dtype)


def fused_rel_conv(a_stack, xw_stack, bias_sum, *, relu, out_dtype):
    """h_dst = act(sum_r A_hat[r] @ XW[r] + bias_sum) in one pallas_call.

    a_stack : [R, n_dst_p, n_src_p] bf16 (prepared once, shared by layers)
    xw_stack: [R, n_src_p, fout_p]  bf16
    bias_sum: [1, fout_p] f32.  All dims are lane dense."""
    R, n_dst_p, n_src_p = a_stack.shape
    fout_p = xw_stack.shape[-1]
    tm = _pick_tm(n_dst_p)
    tk = _pick_tk(n_src_p, tm, fout_p, jnp.dtype(out_dtype).itemsize,
                  _vmem_limit() // 2)
    return pl.pallas_call(
        functools.partial(_rel_sum_kernel, relu=relu),
        out_shape=jax.ShapeDtypeStruct((n_dst_p, fout_p), out_dtype),
        grid=(n_dst_p // tm, R, n_src_p // tk),
        in_specs=[
            pl.BlockSpec((pl.Squeezed(), tm, tk), lambda i, r, k: (r, i, k)),
            pl.BlockSpec((pl.Squeezed(), tk, fout_p), lambda i, r, k: (r, k, 0)),
            pl.BlockSpec((1, fout_p), lambda i, r, k: (0, 0)),
        ],
        out_specs=pl.BlockSpec((tm, fout_p), lambda i, r, k: (i, 0)),
        scratch_shapes=[pltpu.VMEM((tm, fout_p), jnp.float32)],
        compiler_params=pltpu.CompilerParams(
            dimension_semantics=("parallel", "arbitrary", "arbitrary"),
            vmem_limit_bytes=_vmem_limit()),
    )(a_stack, xw_stack, bias_sum)


# ------------------------------ model glue --------------------------------- #

def normalize_adj(a):
    """DGL GraphConv norm='both' normalization of a dense 0/1 adjacency."""
    out_deg = jnp.clip(jnp.sum(a, axis=0), 1.0, None)  # per src node
    in_deg = jnp.clip(jnp.sum(a, axis=1), 1.0, None)   # per dst node
    return a * (in_deg[:, None] ** -0.5) * (out_deg[None, :] ** -0.5)


def _make_groups(adjs, layer_params, rel_names, n_nodes, fin_of, fout,
                 avail_src, a_cache):
    """Per dst type: stacked padded A (cached across layers), stacked padded
    bf16 W, summed f32 bias, src-type index table, padded dims."""
    fout_p = _round_up(fout, LANE)

    by_dst = {}
    for rel in rel_names:
        stype, _, dtype = rel
        if stype not in avail_src:   # DGL HeteroGraphConv skips missing src feats
            continue
        by_dst.setdefault(dtype, []).append(rel)

    groups = {}
    for dtype, rels in by_dst.items():
        src_types = list(dict.fromkeys(r[0] for r in rels))
        n_dst_p = _round_up(n_nodes[dtype], NODE_PAD)
        n_src_p = max(_round_up(n_nodes[s], NODE_PAD) for s in src_types)
        fin_p = max(_round_up(fin_of[s], LANE) for s in src_types)

        a_key = (dtype, tuple(rels), n_dst_p, n_src_p)
        if a_key not in a_cache:   # build once, reused by both layers
            a_cache[a_key] = jnp.stack(
                [_pad2d(adjs[r], n_dst_p, n_src_p, jnp.bfloat16) for r in rels])

        w_stack = jnp.stack(
            [_pad2d(layer_params[r]["w"], fin_p, fout_p, jnp.bfloat16)
             for r in rels])
        b_sum = sum(jnp.pad(layer_params[r]["b"],
                            (0, fout_p - layer_params[r]["b"].shape[0]))
                    for r in rels)
        b_sum = jnp.asarray(b_sum, jnp.float32).reshape(1, fout_p)
        src_ids = jnp.array([src_types.index(r[0]) for r in rels], jnp.int32)

        groups[dtype] = dict(src_types=src_types, src_ids=src_ids,
                             a=a_cache[a_key], n_dst_p=n_dst_p,
                             n_src_p=n_src_p, fin_p=fin_p, fout_p=fout_p,
                             w=w_stack, b=b_sum)
    return groups


def build_state(adjs, params, rel_names, n_nodes, in_feats, hid_feats,
                out_feats):
    """One-time preprocessing: pad/cast/stack adjacencies, weights, biases."""
    a_cache = {}
    groups1 = _make_groups(adjs, params["conv1"], rel_names, n_nodes,
                           in_feats, hid_feats, set(in_feats), a_cache)
    layer1_dst = set(groups1)
    groups2 = _make_groups(adjs, params["conv2"], rel_names, n_nodes,
                           {t: hid_feats for t in layer1_dst}, out_feats,
                           layer1_dst, a_cache)
    return dict(groups1=groups1, groups2=groups2,
                n_nodes=dict(n_nodes), out_feats=out_feats)


def hetero_rgcn_forward(state, inputs):
    # ----- layer 1: conv1 + ReLU (fused), bf16 hidden activations ----- #
    h = {}
    for dtype, g in state["groups1"].items():
        x_stack = jnp.stack(
            [_pad2d(inputs[s], g["n_src_p"], g["fin_p"], jnp.bfloat16)
             for s in g["src_types"]])
        xw = linear_slab(g["src_ids"], x_stack, g["w"])
        h[dtype] = fused_rel_conv(g["a"], xw, g["b"],
                                  relu=True, out_dtype=jnp.bfloat16)

    # ----- layer 2: conv2 ----- #
    out = {}
    for dtype, g in state["groups2"].items():
        x_stack = jnp.stack(
            [_fit_rows(h[s], g["n_src_p"]) for s in g["src_types"]])
        xw = linear_slab(g["src_ids"], x_stack, g["w"])
        out[dtype] = fused_rel_conv(g["a"], xw, g["b"],
                                    relu=False, out_dtype=jnp.float32)

    nf = state["out_feats"]
    return {t: v[: state["n_nodes"][t], :nf] for t, v in out.items()}


def _xavier_uniform(key, shape):
    fan_in, fan_out = shape
    limit = (6.0 / (fan_in + fan_out)) ** 0.5
    return jax.random.uniform(key, shape, jnp.float32, -limit, limit)


def init_params(key, in_feats, hid_feats, out_feats, rel_names):
    # GraphConv: weight = xavier_uniform, bias = zeros (DGL defaults).
    params = {"conv1": {}, "conv2": {}}
    for rel in rel_names:
        key, k1, k2 = jax.random.split(key, 3)
        params["conv1"][rel] = {
            "w": _xavier_uniform(k1, (in_feats[rel[0]], hid_feats)),
            "b": jnp.zeros((hid_feats,), jnp.float32),
        }
        params["conv2"][rel] = {
            "w": _xavier_uniform(k2, (hid_feats, out_feats)),
            "b": jnp.zeros((out_feats,), jnp.float32),
        }
    return params


# ---------------------------------- main ------------------------------------ #

if __name__ == "__main__":
    key = jax.random.PRNGKey(0)

    n_nodes = {"gene": 16, "drug": 24}
    in_feats = {"gene": 8, "drug": 12}
    hid_feats, out_feats = 32, 16
    rel_names = [
        ("gene", "gg", "gene"),
        ("gene", "gd", "drug"),
        ("drug", "dg", "gene"),
    ]

    # deterministic synthetic heterogeneous graph + node features
    key, *ks = jax.random.split(key, 1 + len(rel_names) + len(n_nodes))
    adjs = {}
    for rel, k in zip(rel_names, ks[: len(rel_names)]):
        stype, _, dtype = rel
        raw = jax.random.bernoulli(k, 0.3, (n_nodes[dtype], n_nodes[stype]))
        adjs[rel] = normalize_adj(raw.astype(jnp.float32))

    inputs = {}
    for t, k in zip(n_nodes, ks[len(rel_names):]):
        inputs[t] = jax.random.normal(k, (n_nodes[t], in_feats[t]), jnp.float32)

    params = init_params(key, in_feats, hid_feats, out_feats, rel_names)

    # one-time preprocessing (hoisted out of the forward pass)
    state = build_state(adjs, params, rel_names, n_nodes, in_feats,
                        hid_feats, out_feats)

    out = hetero_rgcn_forward(state, inputs)
    out = {t: jax.block_until_ready(v) for t, v in out.items()}

    # pure-JAX f32 reference for correctness (kernel uses bf16 MXU operands
    # with f32 accumulation -> compare with a modest tolerance)
    def ref_layer(feats, layer_params, relu):
        per_dst = {}
        for rel in rel_names:
            s, _, d = rel
            if s not in feats:
                continue
            y = adjs[rel] @ (feats[s] @ layer_params[rel]["w"]) + layer_params[rel]["b"]
            per_dst.setdefault(d, []).append(y)
        res = {t: sum(ys) for t, ys in per_dst.items()}
        if relu:
            res = {t: jnp.maximum(v, 0.0) for t, v in res.items()}
        return res

    h_ref = ref_layer(inputs, params["conv1"], True)
    h_ref = ref_layer(h_ref, params["conv2"], False)
    for t in out:
        assert out[t].shape == (n_nodes[t], out_feats), (t, out[t].shape)
        assert jnp.allclose(out[t], h_ref[t], atol=2e-2, rtol=2e-2), t

    print("KERNEL_OK")
</pallas_src>

<mosaic_0001>
module attributes {stable_mosaic.version = 11 : i64} {
  func.func @_xw_kernel(%arg0: i32, %arg1: i32, %arg2: memref<2xi32, #tpu.memory_space<smem>>, %arg3: memref<1x256x128xbf16, #tpu.memory_space<vmem>>, %arg4: memref<1x128x128xbf16, #tpu.memory_space<vmem>>, %arg5: memref<1x256x128xbf16, #tpu.memory_space<vmem>>) attributes {dimension_semantics = [#tpu.dimension_semantics<parallel>, #tpu.dimension_semantics<parallel>], iteration_bounds = array<i64: 2, 1>, scalar_prefetch = 1 : i64, scratch_operands = 0 : i64, tpu.core_type = #tpu.core_type<tc>, window_params = [{transform_indices = @transform_0, window_bounds = array<i64: 1, 256, 128>}, {transform_indices = @transform_1, window_bounds = array<i64: 1, 128, 128>}, {transform_indices = @transform_2, window_bounds = array<i64: 1, 256, 128>}]} {
    %c0 = arith.constant 0 : index
    %c0_0 = arith.constant 0 : index
    %c0_1 = arith.constant 0 : index
    %0 = vector.load %arg3[%c0, %c0_0, %c0_1] : memref<1x256x128xbf16, #tpu.memory_space<vmem>>, vector<1x256x128xbf16>
    %1 = vector.shape_cast %0 : vector<1x256x128xbf16> to vector<256x128xbf16>
    %c0_2 = arith.constant 0 : index
    %c0_3 = arith.constant 0 : index
    %c0_4 = arith.constant 0 : index
    %2 = vector.load %arg4[%c0_2, %c0_3, %c0_4] : memref<1x128x128xbf16, #tpu.memory_space<vmem>>, vector<1x128x128xbf16>
    %3 = vector.shape_cast %2 : vector<1x128x128xbf16> to vector<128x128xbf16>
    %cst = arith.constant dense<0.000000e+00> : vector<256x128xf32>
    %4 = tpu.matmul %1, %3, %cst {dimension_numbers = #tpu.dot_dimension_numbers<[1], [0], [0], [1], [0, 0, 1, 1], [], []>} : vector<256x128xbf16>, vector<128x128xbf16>, vector<256x128xf32> -> vector<256x128xf32>
    %5 = arith.truncf %4 : vector<256x128xf32> to vector<256x128xbf16>
    %c0_5 = arith.constant 0 : index
    %c0_6 = arith.constant 0 : index
    %c0_7 = arith.constant 0 : index
    %6 = vector.load %arg5[%c0_5, %c0_6, %c0_7] : memref<1x256x128xbf16, #tpu.memory_space<vmem>>, vector<1x256x128xbf16>
    %7 = vector.shape_cast %6 : vector<1x256x128xbf16> to vector<256x128xbf16>
    %8 = vector.shape_cast %5 : vector<256x128xbf16> to vector<1x256x128xbf16>
    tpu.vector_store %arg5[%c0_5, %c0_6, %c0_7], %8 {strides = array<i32>} : memref<1x256x128xbf16, #tpu.memory_space<vmem>>, vector<1x256x128xbf16>,
    return
  }
  func.func @transform_0(%arg0: i32, %arg1: i32, %arg2: memref<2xi32, #tpu.memory_space<smem>>) -> (i32, i32, i32) {
    %0 = arith.index_cast %arg0 : i32 to index
    %1 = memref.load %arg2[%0] : memref<2xi32, #tpu.memory_space<smem>>
    %c0_i32 = arith.constant 0 : i32
    %c0_i32_0 = arith.constant 0 : i32
    return %1, %arg1, %c0_i32 : i32, i32, i32
  }
  func.func @transform_1(%arg0: i32, %arg1: i32, %arg2: memref<2xi32, #tpu.memory_space<smem>>) -> (i32, i32, i32) {
    %c0_i32 = arith.constant 0 : i32
    %c0_i32_0 = arith.constant 0 : i32
    %c0_i32_1 = arith.constant 0 : i32
    return %arg0, %c0_i32, %c0_i32_0 : i32, i32, i32
  }
  func.func @transform_2(%arg0: i32, %arg1: i32, %arg2: memref<2xi32, #tpu.memory_space<smem>>) -> (i32, i32, i32) {
    %c0_i32 = arith.constant 0 : i32
    %c0_i32_0 = arith.constant 0 : i32
    return %arg0, %arg1, %c0_i32 : i32, i32, i32
  }
}

</mosaic_0001>

<bundles_post_ra>
// kernel: tpu_custom_call.1
= control target key start
LH: loop header
LB: loop body
LE: loop exit
PB: predicated region body
PF: predicated region fallthrough
CT: control target
= control target key end

     0   :  { %s1259_s15 = smov [#allocation3]   ;;  %s1565_s0 = inlined_call_operand.hbm [shape: s32[2], index: 0, kind: input, shape index: {}]   ;;  %s1566_s1 = inlined_call_operand.hbm [shape: bf16[2,256,128], index: 1, kind: input, shape index: {}]   ;;  %s1567_s2 = inlined_call_operand.hbm [shape: bf16[2,128,128], index: 2, kind: input, shape index: {}]   ;;  %s1568_s3 = inlined_call_operand.hbm [shape: bf16[2,256,128], index: 3, kind: output, shape index: {}]  }
   0x1   :  { %1575 = sst [smem:[#allocation20_spill]] %s1566_s1  ;;  %s9_s14 = sshll.u32 %s1565_s0, 4  ;;  %s10_s14 = int_to_ptr.hbm [resolvable:$true] %s9_s14 }
   0x2   :  { %12 = dma.hbm_to_smem %s10_s14, 16, %s1259_s15, [#allocation2] }
   0x3   :  { %1209 = dma.done.wait [#allocation2], 16 }
   0x4   :  { %1210 = vsyncadd [#allocation2], 4294967280 }
   0x5   :  { %15 = sfence }
   0x6   :  { %16 = vsyncpa [#allocation5], 0 }
   0x7   :  { %18 = vsyncpa [#allocation5 + $0x1], 0 }
   0x8   :  { %19 = vsyncpa [#allocation8], 0 }
   0x9   :  { %21 = vsyncpa [#allocation8 + $0x1], 0 }
   0xa   :  { %22 = vsyncpa [#allocation6], 0 }
   0xb   :  { %24 = vsyncpa [#allocation6 + $0x1], 0  ;;  %s1287_s16 = smov 0   ;;  %s1289_s17 = smov 0  }
   0xc   :  { %s1291_s18 = smov 0   ;;  %s1293_s19 = smov 0  }
   0xd   :  { %s1295_s0 = smov 0   ;;  %s1297_s20 = smov 0  }
   0xe   :  { %s1299_s21 = smov 0   ;;  %s1301_s22 = smov 0  }
   0xf   :  { %s1303_s23 = smov 0  }
  0x10 LB: > { %1576 = sst [smem:[#allocation16_spill]] %s1253_s22  ;;  %s42_s24 = sadd.s32 1, %s1253_s22  ;;  %s1257_s23 = sphi %s1303_s23, %s30_s23   ;;  %s1253_s22 = sphi %s1301_s22, %s1598_s22   ;;  %s1249_s21 = sphi %s1299_s21, %s1597_s21   ;;  %s1245_s20 = sphi %s1297_s20, %s1604_s20   ;;  %s1241_s0 = sphi %s1295_s0, %s1603_s0   ;;  %s1237_s19 = sphi %s1293_s19, %s1602_s19   ;;  %s1233_s18 = sphi %s1291_s18, %s1601_s18   ;;  %s1229_s17 = sphi %s1289_s17, %s1600_s17   ;;  %s1225_s16 = sphi %s1287_s16, %s1599_s16  }
  0x11   : > { %s1569_s25 = sadd.s32 4294967295, %s1257_s23   ;;  %p44_p0 = scmp.ge.s32.totalorder %s42_s24, 2 }
  0x12   : > { %s46_s26 = sld [smem:[#allocation3 + %s1253_s22]]  ;;  %p60_p1 = scmp.ne.s32.totalorder %s1245_s20, %s1241_s0 }
  0x13   : > { %s1606_s24 = smov (%p44_p0, %s42_s24), 0  ;;  %p1572_p2 = scmp.eq.s32.totalorder %s1257_s23, 0 }
  0x14   : > { %1577 = sst [smem:[#allocation17_spill]] %s1606_s24  ;;  %p66_p3 = scmp.ne.s32.totalorder %s1241_s0, %s1237_s19 }
  0x15   : > { %s47_s27 = sld [smem:[#allocation3 + %s1606_s24]]  ;;  %p1342_p4 = scmp.eq.s32.totalorder %s1569_s25, 0 }
  0x16   : > { %s53_s29 = sadd.s32 1, %s1245_s20  ;;  %p1350_p6 = por %p1572_p2, %p60_p1 }
  0x17   : > { %p1356_p7 = por %p1342_p4, %p66_p3  ;;  %p1571_p8 = scmp.lt.s32.totalorder %s1257_s23, 2 }
  0x18   : > { %s144_s5 = sand.u32 1, %s1245_s20   ;;  %p722_p11 = scmp.ge.s32.totalorder %s1257_s23, 1 }
  0x19   : > { %s716_s6 = sshll.u32 %s144_s5, 7  ;;  %p1366_p9 = pnand %p1571_p8, %p1350_p6 }
  0x1a   : > { %s148_s9 = scalar_lea.vmem [#allocation4], %s716_s6  ;;  %p189_p12 = scmp.lt.s32.totalorder %s1257_s23, 3 }
  0x1b   : > { %s48_s7 = ssub.s32 %s46_s26, %s47_s27  ;;  %s1370_s10 = sshll.u32 %s148_s9, 4 }
  0x1c   : > { %p51_p10 = scmp.eq.s32.totalorder %s48_s7, 0  ;;  %1582 = sst [smem:[#allocation18_spill]] %s1370_s10 }
  0x1d   : > { %s973_s11 = scalar_select %p1350_p6, [#allocation3], [#allocation10] }
  0x1e   : > { %s1375_s12 = scalar_select %p51_p10, %s1245_s20, %s53_s29  }
  0x1f   : > { %s974_s13 = scalar_select %p1350_p6, %s1253_s22, 0 }
  0x20   : > { %1583 = sst [smem:[#allocation19_spill]] %s1375_s12  ;;  %s1608_s11 = smov (!%p1571_p8, %s973_s11), [#allocation11] }
  0x21   : > { %s1610_s13 = smov (!%p1571_p8, %s974_s13), 0  ;;  %p1387_p13 = pnand %p722_p11, %p189_p12 }
  0x22   : > { %s149_s14 = sld [smem:[%s1608_s11 + %s1610_s13]]  ;;  %s76_s19 = ssub.s32 %s1253_s22, %s1606_s24 }
  0x23   : > { %s713_s27 = sadd.s32 4294967294, %s1257_s23   ;;  %s1585_s1 = sld [smem:[#allocation20_spill]] }
  0x24   : > { %p1397_p0 = scmp.eq.s32.totalorder %s76_s19, 0  ;;  %s79_s11 = sadd.s32 1, %s1233_s18 }
  0x25   : > { %p92_p1 = scmp.ne.s32.totalorder %s1229_s17, %s1225_s16  ;;  %s145_s13 = scalar_lea.sflag [#allocation5], %s144_s5 }
  0x26   : > { %p1089_p6 = pneg %p1366_p9 }
  0x28   : > { %s827_s26 = sshll.u32 %s149_s14, 7 }
  0x29   : > { %s156_s6 = scalar_lea.hbm %s1585_s1, %s827_s26  ;;  %s1092_s19 = scalar_lea.hbm %s1585_s1, 256 }
  0x2a   : > { %s157_s9 = sshll.u32 %s156_s6, 4  ;;  %s158_s9 = int_to_ptr.hbm [resolvable:$true] %s157_s9 }
  0x2b   : > { %s1085_s25 = sshra.s32 %s158_s9, 4  ;;  %s1086_s25 = int_to_ptr.hbm [resolvable:$true] %s1085_s25 }
  0x2c   : > { %s1087_s10 = scalar_lea.hbm %s1086_s25, 128  ;;  %p1093_p12 = scmp.lt.s32.totalorder %s1086_s25, %s1585_s1 }
  0x2d   : > { %p1088_p3 = scmp.ne.s32.totalorder %s1086_s25, %s1087_s10  ;;  %p1094_p5 = scmp.lt.s32.totalorder %s1092_s19, %s1087_s10 }
  0x2f   : > { %p1090_p10 = pnand %p1089_p6, %p1088_p3  ;;  %p1095_p8 = por %p1094_p5, %p1093_p12 }
  0x31   : > { %p1091_p11 = pneg %p1090_p10 }
  0x33   : > { %p1096_p2 = pnand %p1095_p8, %p1091_p11 }
  0x35   : > { %1099 = shalt.err (!%p1096_p2)
}
  0x36   : > { %s1260_s5 = smov 64   ;;  %s1587_s6 = sld [smem:[#allocation18_spill]] }
  0x37   : > { %s1261_s25 = smov 4   ;;  %p86_p2 = scmp.ne.s32.totalorder %s1233_s18, %s1229_s17 }
  0x38   : > { %s1419_s14 = scalar_select %p1397_p0, %s1233_s18, %s79_s11  }
  0x39   : > { %p1428_p5 = por %p92_p1, %p1342_p4  ;;  %s1590_s19 = sadd.s32 4294967295, %s1257_s23  }
  0x3a   : > { %p118_p8 = scmp.eq.s32.totalorder %s1590_s19, 1  ;;  %p124_p3 = scmp.eq.s32.totalorder %s713_s27, 1 }
  0x3b   : > { %s169_s26 = sand.u32 1, %s1233_s18   ;;  %s828_s30 = sshll.u32 %s1253_s22, 6 }
  0x3c   : > { %s1588_s10 = int_to_ptr.vmem [resolvable:$true] %s1587_s6  ;;  %p1436_p6 = por %p118_p8, %p86_p2 }
  0x3d   : > { %986 = dma.hbm_to_vmem [thread:$0]  (!%p1366_p9), %s158_s9, 2048, %s1588_s10, %s145_s13, %s1260_s5, %s1260_s5, %s1261_s25  }
  0x3e   : > { %p1443_p9 = por %p124_p3, %p92_p1  ;;  %p1593_p0 = scmp.eq.s32.totalorder %s1257_s23, 0 }
  0x3f   : > { %s719_s28 = sshll.u32 %s169_s26, 6  ;;  %s178_s13 = scalar_lea.hbm %s1567_s2, %s828_s30 }
  0x40   : > { %p88_p10 = por %p86_p2, %p1593_p0  ;;  %s179_s6 = sshll.u32 %s178_s13, 4  ;;  %s180_s6 = int_to_ptr.hbm [resolvable:$true] %s179_s6 }
  0x41   : > { %s173_s27 = scalar_lea.vmem [#allocation7], %s719_s28  ;;  %p1594_p4 = scmp.lt.s32.totalorder %s1257_s23, 2 }
  0x42   : > { %s181_s10 = sshll.u32 %s173_s27, 4  ;;  %s170_s19 = scalar_lea.sflag [#allocation8], %s169_s26  ;;  %s182_s10 = int_to_ptr.vmem [resolvable:$true] %s181_s10 }
  0x43   : > { %p987_p11 = pnand %p1594_p4, %p88_p10  ;;  %193 = sbr.rel (%p1387_p13) target bundleno = 305 (0x131), region = 28 }
  0x44   : > { %s195_s1 = sand.u32 (!%p1387_p13), 1, %s1241_s0  }
  0x45   : > { %989 = dma.hbm_to_vmem [thread:$0]  (!%p987_p11), %s180_s6, 1024, %s182_s10, %s170_s19, %s1260_s5, %s1260_s5, %s1261_s25  }
  0x46   : > { %s723_s24 = sshll.u32 (!%p1387_p13), %s195_s1, 7  ;;  %s196_s22 = scalar_lea.sflag (!%p1387_p13), [#allocation5], %s195_s1 }
  0x47   : > { %s1457_s12 = scalar_lea.vmem (!%p1387_p13), [#allocation4], %s723_s24 }
  0x48   : > { %1212 = dma.done.wait (%p1356_p7), %s196_s22, 2048  }
  0x49   : > { %1214 = vsyncadd (%p1356_p7), %s196_s22, 4294965248  ;;  %s1464_s30 = sand.u32 1, %s1229_s17  }
  0x4a   : > { %s724_s15 = sshll.u32 %s1464_s30, 6  ;;  %s206_s5 = scalar_lea.sflag [#allocation8], %s1464_s30 }
  0x4b   : > { %s1468_s25 = scalar_lea.vmem [#allocation7], %s724_s15 }
  0x4c   : > { %1216 = dma.done.wait (%p1428_p5), %s206_s5, 1024  }
  0x4d   : > { %1218 = vsyncadd (%p1428_p5), %s206_s5, 4294966272  ;;  %v852_v0 = vld [vmem:[%s1468_s25 + $0x38] sm:$0xff]  ;;  %v851_v1 = vld [vmem:[%s1468_s25 + $0x30] sm:$0xff]  ;;  %s725_s1 = sshll.u32 %s1464_s30, 7  ;;  %s853_s24 = sshll.u32 %s1249_s21, 7 }
  0x4e   : > { %431 = vmatpush.bf16.msra.mxu0 %v852_v0  ;;  %949 = vmatpush.bf16.msra.mxu1 %v852_v0  ;;  %v850_v2 = vld [vmem:[%s1468_s25 + $0x28] sm:$0xff]  ;;  %v849_v3 = vld [vmem:[%s1468_s25 + $0x20] sm:$0xff]  ;;  %v848_v4 = vld [vmem:[%s1468_s25 + $0x18] sm:$0xff]  ;;  %s1499_s22 = scalar_lea.vmem [#allocation9], %s725_s1  ;;  %s598_s29 = scalar_lea.hbm %s1568_s3, %s853_s24 }
  0x4f   : > { %950 = vmatpush.bf16.msra.mxu2 %v852_v0  ;;  %951 = vmatpush.bf16.msra.mxu3 %v852_v0  ;;  %v847_v5 = vld [vmem:[%s1468_s25 + $0x10] sm:$0xff]  ;;  %v846_v6 = vld [vmem:[%s1468_s25 + $0x8] sm:$0xff]  ;;  %v845_v7 = vld [vmem:[%s1468_s25] sm:$0xff]  ;;  %s599_s26 = sshll.u32 %s1499_s22, 4  ;;  %s601_s28 = sshll.u32 %s598_s29, 4  ;;  %s600_s26 = int_to_ptr.vmem [resolvable:$true] %s599_s26  ;;  %s602_s28 = int_to_ptr.hbm [resolvable:$true] %s601_s28 }
  0x50   : > { %v829_v8 = vld [vmem:[%s1457_s12] sm:$0xff]  ;;  %v830_v12 = vld [vmem:[%s1457_s12 + $0x8] sm:$0xff]  ;;  %v831_v16 = vld [vmem:[%s1457_s12 + $0x10] sm:$0xff]  ;;  %s585_s21 = scalar_lea.sflag [#allocation6], %s1464_s30  ;;  %s1159_s9 = sshra.s32 %s602_s28, 4  ;;  %s1160_s9 = int_to_ptr.hbm [resolvable:$true] %s1159_s9 }
  0x51   : > { %v833_v9 = vld [vmem:[%s1457_s12 + $0x20] sm:$0xff]  ;;  %v834_v13 = vld [vmem:[%s1457_s12 + $0x28] sm:$0xff]  ;;  %v835_v17 = vld [vmem:[%s1457_s12 + $0x30] sm:$0xff]  ;;  %s1161_s11 = scalar_lea.hbm %s1160_s9, 128  ;;  %s1165_s27 = scalar_lea.hbm %s1568_s3, 256 }
  0x52   : > { %432 = vmatpush.bf16.msra.mxu0 %v851_v1  ;;  %952 = vmatpush.bf16.msra.mxu1 %v851_v1  ;;  %v837_v10 = vld [vmem:[%s1457_s12 + $0x40] sm:$0xff]  ;;  %v838_v14 = vld [vmem:[%s1457_s12 + $0x48] sm:$0xff]  ;;  %v839_v18 = vld [vmem:[%s1457_s12 + $0x50] sm:$0xff]  ;;  %p1162_p7 = scmp.ne.s32.totalorder %s1160_s9, %s1161_s11  ;;  %p1166_p12 = scmp.lt.s32.totalorder %s1160_s9, %s1568_s3 }
  0x53   : > { %953 = vmatpush.bf16.msra.mxu2 %v851_v1  ;;  %954 = vmatpush.bf16.msra.mxu3 %v851_v1  ;;  %v841_v11 = vld [vmem:[%s1457_s12 + $0x60] sm:$0xff]  ;;  %v842_v15 = vld [vmem:[%s1457_s12 + $0x68] sm:$0xff]  ;;  %v843_v19 = vld [vmem:[%s1457_s12 + $0x70] sm:$0xff]  ;;  %p1167_p2 = scmp.lt.s32.totalorder %s1165_s27, %s1161_s11 }
  0x54   : > { %v832_v20 = vld [vmem:[%s1457_s12 + $0x18] sm:$0xff]  ;;  %p1163_p13 = pnand %p1162_p7, %p1436_p6 }
  0x55   : > { %v836_v21 = vld [vmem:[%s1457_s12 + $0x38] sm:$0xff]  ;;  %p1168_p5 = por %p1167_p2, %p1166_p12 }
  0x56   : > { %433 = vmatpush.bf16.msra.mxu0 %v850_v2  ;;  %955 = vmatpush.bf16.msra.mxu1 %v850_v2  ;;  %v840_v22 = vld [vmem:[%s1457_s12 + $0x58] sm:$0xff]  ;;  %p1164_p1 = pneg %p1163_p13 }
  0x57   : > { %956 = vmatpush.bf16.msra.mxu2 %v850_v2  ;;  %957 = vmatpush.bf16.msra.mxu3 %v850_v2  ;;  %v844_v23 = vld [vmem:[%s1457_s12 + $0x78] sm:$0xff] }
  0x58   : > { %p1169_p8 = pnand %p1168_p5, %p1164_p1 }
  0x5a   : > { %434 = vmatpush.bf16.msra.mxu0 %v849_v3  ;;  %958 = vmatpush.bf16.msra.mxu1 %v849_v3 }
  0x5b   : > { %959 = vmatpush.bf16.msra.mxu2 %v849_v3  ;;  %960 = vmatpush.bf16.msra.mxu3 %v849_v3 }
  0x5e   : > { %435 = vmatpush.bf16.msra.mxu0 %v848_v4  ;;  %961 = vmatpush.bf16.msra.mxu1 %v848_v4 }
  0x5f   : > { %962 = vmatpush.bf16.msra.mxu2 %v848_v4  ;;  %963 = vmatpush.bf16.msra.mxu3 %v848_v4 }
  0x62   : > { %436 = vmatpush.bf16.msra.mxu0 %v847_v5  ;;  %964 = vmatpush.bf16.msra.mxu1 %v847_v5 }
  0x63   : > { %965 = vmatpush.bf16.msra.mxu2 %v847_v5  ;;  %966 = vmatpush.bf16.msra.mxu3 %v847_v5 }
  0x66   : > { %437 = vmatpush.bf16.msra.mxu0 %v846_v6  ;;  %967 = vmatpush.bf16.msra.mxu1 %v846_v6 }
  0x67   : > { %968 = vmatpush.bf16.msra.mxu2 %v846_v6  ;;  %969 = vmatpush.bf16.msra.mxu3 %v846_v6 }
  0x6a   : > { %438 = vmatpush.bf16.msra.mxu0 %v845_v7  ;;  %970 = vmatpush.bf16.msra.mxu1 %v845_v7 }
  0x6b   : > { %971 = vmatpush.bf16.msra.mxu2 %v845_v7  ;;  %972 = vmatpush.bf16.msra.mxu3 %v845_v7 }
  0x6d   : > { %439 = vmatmul.bf16.vlgmr.msra.gmra.mxu0 %v829_v8  ;;  %459 = vmatmul.bf16.vlgmr.msra.gmra.mxu1 %v833_v9 }
  0x6e   : > { %479 = vmatmul.bf16.vlgmr.msra.gmra.mxu2 %v837_v10  ;;  %499 = vmatmul.bf16.vlgmr.msra.gmra.mxu3 %v841_v11 }
  0x7d   : > { %444 = vmatmul.bf16.gmra.mxu0 %v830_v12  ;;  %464 = vmatmul.bf16.gmra.mxu1 %v834_v13 }
  0x7e   : > { %484 = vmatmul.bf16.gmra.mxu2 %v838_v14  ;;  %504 = vmatmul.bf16.gmra.mxu3 %v842_v15 }
  0x8d   : > { %449 = vmatmul.bf16.gmra.mxu0 %v831_v16  ;;  %469 = vmatmul.bf16.gmra.mxu1 %v835_v17 }
  0x8e   : > { %489 = vmatmul.bf16.gmra.mxu2 %v839_v18  ;;  %509 = vmatmul.bf16.gmra.mxu3 %v843_v19 }
  0x9d   : > { %454 = vmatmul.bf16.gmra.mxu0 %v832_v20  ;;  %474 = vmatmul.bf16.gmra.mxu1 %v836_v21 }
  0x9e   : > { %494 = vmatmul.bf16.gmra.mxu2 %v840_v22  ;;  %514 = vmatmul.bf16.gmra.mxu3 %v844_v23 }
  0xea   : > { %v440_v24 = vpop.f32.mrf.mxu0  ;;  %v460_v25 = vpop.f32.mrf.mxu1 }
  0xf1   : > { %v480_v26 = vpop.f32.mrf.mxu2  ;;  %v500_v27 = vpop.f32.mrf.mxu3 }
  0xf2   : > { %v442_v28 = vpop.f32.mrf.mxu0  ;;  %v462_v29 = vpop.f32.mrf.mxu1 }
  0xf3   : > { %v857_v30 = vpack.c.bf16 %v442_v28, %v440_v24  ;;  %v877_v31 = vpack.c.bf16 %v462_v29, %v460_v25 }
  0xf5   : > { %858 = vst [vmem:[%s1499_s22] sm:$0xff] %v857_v30  }
  0xf6   : > { %937 = vst [vmem:[%s1499_s22 + $0x20] sm:$0xff] %v877_v31  }
  0xf9   : > { %v482_v32 = vpop.f32.mrf.mxu2  ;;  %v502_v33 = vpop.f32.mrf.mxu3 }
  0xfa   : > { %v897_v34 = vpack.c.bf16 %v482_v32, %v480_v26  ;;  %v917_v35 = vpack.c.bf16 %v502_v33, %v500_v27  ;;  %v445_v36 = vpop.f32.mrf.mxu0  ;;  %v465_v37 = vpop.f32.mrf.mxu1 }
  0xfc   : > { %941 = vst [vmem:[%s1499_s22 + $0x40] sm:$0xff] %v897_v34  }
  0xfd   : > { %945 = vst [vmem:[%s1499_s22 + $0x60] sm:$0xff] %v917_v35  }
 0x101   : > { %v485_v38 = vpop.f32.mrf.mxu2  ;;  %v505_v39 = vpop.f32.mrf.mxu3 }
 0x102   : > { %v447_v40 = vpop.f32.mrf.mxu0  ;;  %v467_v41 = vpop.f32.mrf.mxu1 }
 0x103   : > { %v862_v42 = vpack.c.bf16 %v447_v40, %v445_v36  ;;  %v882_v43 = vpack.c.bf16 %v467_v41, %v465_v37 }
 0x105   : > { %934 = vst [vmem:[%s1499_s22 + $0x8] sm:$0xff] %v862_v42  }
 0x106   : > { %938 = vst [vmem:[%s1499_s22 + $0x28] sm:$0xff] %v882_v43  }
 0x109   : > { %v487_v44 = vpop.f32.mrf.mxu2  ;;  %v507_v45 = vpop.f32.mrf.mxu3 }
 0x10a   : > { %v902_v46 = vpack.c.bf16 %v487_v44, %v485_v38  ;;  %v922_v47 = vpack.c.bf16 %v507_v45, %v505_v39  ;;  %v450_v48 = vpop.f32.mrf.mxu0  ;;  %v470_v49 = vpop.f32.mrf.mxu1 }
 0x10c   : > { %942 = vst [vmem:[%s1499_s22 + $0x48] sm:$0xff] %v902_v46  }
 0x10d   : > { %946 = vst [vmem:[%s1499_s22 + $0x68] sm:$0xff] %v922_v47  }
 0x111   : > { %v490_v50 = vpop.f32.mrf.mxu2  ;;  %v510_v51 = vpop.f32.mrf.mxu3 }
 0x112   : > { %v452_v52 = vpop.f32.mrf.mxu0  ;;  %v472_v53 = vpop.f32.mrf.mxu1 }
 0x113   : > { %v867_v54 = vpack.c.bf16 %v452_v52, %v450_v48  ;;  %v887_v55 = vpack.c.bf16 %v472_v53, %v470_v49 }
 0x115   : > { %935 = vst [vmem:[%s1499_s22 + $0x10] sm:$0xff] %v867_v54  }
 0x116   : > { %939 = vst [vmem:[%s1499_s22 + $0x30] sm:$0xff] %v887_v55  }
 0x119   : > { %v492_v56 = vpop.f32.mrf.mxu2  ;;  %v512_v57 = vpop.f32.mrf.mxu3 }
 0x11a   : > { %v907_v58 = vpack.c.bf16 %v492_v56, %v490_v50  ;;  %v927_v59 = vpack.c.bf16 %v512_v57, %v510_v51  ;;  %v455_v60 = vpop.f32.mrf.mxu0  ;;  %v475_v61 = vpop.f32.mrf.mxu1 }
 0x11c   : > { %943 = vst [vmem:[%s1499_s22 + $0x50] sm:$0xff] %v907_v58  }
 0x11d   : > { %947 = vst [vmem:[%s1499_s22 + $0x70] sm:$0xff] %v927_v59  }
 0x121   : > { %v495_v62 = vpop.f32.mrf.mxu2  ;;  %v515_v63 = vpop.f32.mrf.mxu3 }
 0x122   : > { %v457_v0 = vpop.f32.mrf.mxu0  ;;  %v477_v1 = vpop.f32.mrf.mxu1 }
 0x123   : > { %v872_v2 = vpack.c.bf16 %v457_v0, %v455_v60  ;;  %v892_v3 = vpack.c.bf16 %v477_v1, %v475_v61 }
 0x125   : > { %936 = vst [vmem:[%s1499_s22 + $0x18] sm:$0xff] %v872_v2  }
 0x126   : > { %940 = vst [vmem:[%s1499_s22 + $0x38] sm:$0xff] %v892_v3  }
 0x129   : > { %v497_v4 = vpop.f32.mrf.mxu2  ;;  %v517_v5 = vpop.f32.mrf.mxu3 }
 0x12a   : > { %v912_v6 = vpack.c.bf16 %v497_v4, %v495_v62  ;;  %v932_v7 = vpack.c.bf16 %v517_v5, %v515_v63 }
 0x12c   : > { %944 = vst [vmem:[%s1499_s22 + $0x58] sm:$0xff] %v912_v6  }
 0x12d   : > { %948 = vst [vmem:[%s1499_s22 + $0x78] sm:$0xff] %v932_v7  }
 0x12e   : > { %1172 = shalt.err (!%p1169_p8)
}
 0x12f   : > { %s1262_s30 = smov 64   ;;  %s1263_s15 = smov 4  }
 0x130   : > { %979 = dma.vmem_to_hbm [thread:$0]  (%p1436_p6), %s600_s26, 2048, %s602_s28, %s585_s21, %s1262_s30, %s1262_s30, %s1263_s15  }
 0x131 PF: > { %s616_s5 = sand.u32 1, %s1225_s16   ;;  %p1595_p3 = scmp.ge.s32.totalorder %s1257_s23, 2 }
 0x132   : > { %s617_s25 = scalar_lea.sflag [#allocation6], %s616_s5 }
 0x133   : > { %p991_p0 = pnand %p1595_p3, %p1443_p9 }
 0x135   : > { %p992_p10 = pneg %p991_p0 }
 0x137   : > { %1220 = dma.done.wait (%p992_p10), %s617_s25, 2048  }
 0x138   : > { %1222 = vsyncadd (%p992_p10), %s617_s25, 4294965248  ;;  %s30_s23 = sadd.s32 1, %s1257_s23   ;;  %s1596_s8 = sld [smem:[#allocation19_spill]] }
 0x139   : > { %p27_p4 = scmp.ge.s32.totalorder %s30_s23, 4   ;;  %s1597_s21 = sld [smem:[#allocation16_spill]] }
 0x13a   : > { %s1598_s22 = sld [smem:[#allocation17_spill]]  ;;  %s1599_s16 = smov %s1229_s17 }
 0x13b   : > { %s1600_s17 = smov %s1233_s18  ;;  %s1601_s18 = smov %s1419_s14 }
 0x13c   : > { %s1602_s19 = smov %s1241_s0  ;;  %s1603_s0 = smov %s1245_s20 }
 0x13d   :  { %29 = sbr.rel (!%p27_p4) target bundleno = 16 (0x10), region = 86 }
 0x13e   : > { %s1604_s20 = smov %s1596_s8 }
 0x142   :  { %623 = vsyncpa [#allocation5], 1 }
 0x143   :  { %625 = vsyncpa [#allocation5 + $0x1], 1 }
 0x144   :  { %626 = vsyncpa [#allocation8], 1 }
 0x145   :  { %628 = vsyncpa [#allocation8 + $0x1], 1 }
 0x146   :  { %629 = vsyncpa [#allocation6], 1 }
 0x147   :  { %631 = vsyncpa [#allocation6 + $0x1], 1 }

</bundles_post_ra>
